<compile_context>
chip_gen: v7x
topology: tpu7x:2x2x1
jax: 0.10.0
libtpu: 0.0.40
codegen_flags: <defaults>
</compile_context>

<pallas_src>
import functools

import jax
import jax.numpy as jnp
import numpy as np
from jax import lax
from jax.experimental import pallas as pl
from jax.experimental.pallas import tpu as pltpu


def _round_up(v, m):
    return (v + m - 1) // m * m


def _moe_kernel(order_ref, cnt_ref,                         # scalar prefetch (SMEM)
                x_ref, w1_ref, w3_ref, w2_ref, route_ref,   # inputs
                o_ref,                                       # output
                acc_ref, col_ref):                           # VMEM scratch
    """Grid = (S tiles, expert slots, F tiles). Accumulates into acc_ref."""
    s = pl.program_id(1)          # expert slot (compacted: active experts first)
    f = pl.program_id(2)          # F tile
    live = s < cnt_ref[0]

    @pl.when((s == 0) & (f == 0))
    def _():
        acc_ref[...] = jnp.zeros_like(acc_ref)

    # Routing column for this expert is f-invariant: extract it once per
    # expert slot (XLU select + cross-lane reduce) into a (ts, 1) scratch.
    @pl.when(live & (f == 0))
    def _():
        eid = order_ref[s]
        ts, n_e = route_ref.shape
        lane = lax.broadcasted_iota(jnp.int32, (ts, n_e), 1)
        col_ref[...] = jnp.sum(jnp.where(lane == eid, route_ref[...], 0.0),
                               axis=1, keepdims=True)

    # Only do work for live (active-expert) slots; dead slots also have their
    # weight DMA elided by the index_map (block index frozen).
    @pl.when(live)
    def _():
        xb = x_ref[...]                                               # (ts, H) bf16
        h1 = jnp.dot(xb, w1_ref[...], preferred_element_type=jnp.float32)  # (ts, tf)
        h3 = jnp.dot(xb, w3_ref[...], preferred_element_type=jnp.float32)  # (ts, tf)
        # Fold the per-token routing weight into h (ts x tf) instead of
        # scaling the (ts x H) f32 expert output on every F step.
        h = (jax.nn.silu(h1) * h3 * col_ref[...]).astype(jnp.bfloat16)
        acc_ref[...] += jnp.dot(h, w2_ref[...],
                                preferred_element_type=jnp.float32)   # (ts, H)

    @pl.when((s == pl.num_programs(1) - 1) & (f == pl.num_programs(2) - 1))
    def _():
        o_ref[...] = acc_ref[...].astype(o_ref.dtype)


def prepare_moe_weights(gate_w, w1, w3, w2):
    """One-time weight preparation (call OUTSIDE the hot path).

    - Casts expert weights to bf16 (halves HBM streaming, bf16 MXU path).
    - w1/w3: torch (E, F, H) -> (E, H, F) so the x @ w dot is a plain NN
      contraction (no in-kernel XLU transpose).
    - w2:    torch (E, H, F) -> (E, F, H) so the h @ w2 dot is NN as well.
    - Gate stays f32 (tiny; routing precision matters).
    """
    return (jnp.asarray(gate_w, jnp.float32),
            jnp.transpose(jnp.asarray(w1, jnp.bfloat16), (0, 2, 1)),
            jnp.transpose(jnp.asarray(w3, jnp.bfloat16), (0, 2, 1)),
            jnp.transpose(jnp.asarray(w2, jnp.bfloat16), (0, 2, 1)))


@functools.partial(jax.jit, static_argnames=("top_k", "tf", "ts"))
def dense_moe(x, gate_w, w1t, w3t, w2t, *, top_k, tf=None, ts=None):
    """
    x:      (S, H)  activations
    gate_w: (E, H)  f32   (torch Linear (out, in))
    w1t,w3t:(E, H, F) bf16 (pre-transposed once by prepare_moe_weights)
    w2t:    (E, F, H) bf16 (pre-transposed once by prepare_moe_weights)
    """
    S, H = x.shape
    E, _, F = w1t.shape

    # ---- tile defaults + VMEM budget --------------------------------------
    if ts is None:
        ts = min(256, _round_up(S, 8))    # raise to 512-1024 on v6e prefill
    if tf is None:
        # Keep 3 weight specs x 2 buffers x (tf*H) bf16 under ~24 MiB.
        cap = max(128, (24 * 2**20) // (3 * 2 * H * 2) // 128 * 128)
        tf = F
        for cand in (512, 384, 256, 128):
            if cand <= min(F, cap) and F % cand == 0:
                tf = cand
                break
    assert F % tf == 0
    nf = F // tf

    S_pad = _round_up(S, ts)
    ns = S_pad // ts
    # At most S*top_k distinct experts can be active -> cap the grid axis.
    n_slots = min(E, S * top_k)

    # ---- gating (glue; matches the PyTorch reference semantics) ------------
    logits = jnp.dot(x.astype(jnp.float32), gate_w.T)                 # (S, E)
    probs = jax.nn.softmax(logits, axis=-1)
    if top_k < E:
        _, top_idx = lax.top_k(probs, top_k)
        keep = jnp.zeros_like(probs).at[
            jnp.arange(S)[:, None], top_idx].set(1.0)
        probs = probs * keep
    route = (probs / jnp.sum(probs, axis=-1, keepdims=True)
             ).astype(jnp.float32)                                    # (S, E)

    # ---- compacted active-expert list for scalar prefetch ------------------
    active = jnp.sum(route, axis=0) > 0.0                             # (E,)
    count = jnp.sum(active.astype(jnp.int32)).reshape(1)              # (1,)
    order = jnp.argsort(-active.astype(jnp.int32)).astype(jnp.int32)  # active first

    # ---- cast x once to bf16; pad tokens to a multiple of ts ---------------
    xb = x.astype(jnp.bfloat16)
    if S_pad != S:
        xb = jnp.pad(xb, ((0, S_pad - S), (0, 0)))
        route = jnp.pad(route, ((0, S_pad - S), (0, 0)))  # zero weight = no-op rows

    # ---- index maps ---------------------------------------------------------
    def tok_map(si, s, f, order_ref, cnt_ref):            # x / route / out
        return (si, 0)

    def w13_map(si, s, f, order_ref, cnt_ref):             # (E, H, F) tiles
        c = cnt_ref[0]
        e = order_ref[jnp.maximum(jnp.minimum(s, c - 1), 0)]
        ff = jnp.where(s < c, f, nf - 1)   # dead slots: freeze block -> DMA elided
        return (e, 0, ff)

    def w2_map(si, s, f, order_ref, cnt_ref):              # (E, F, H) tiles
        c = cnt_ref[0]
        e = order_ref[jnp.maximum(jnp.minimum(s, c - 1), 0)]
        ff = jnp.where(s < c, f, nf - 1)
        return (e, ff, 0)

    # ---- VMEM budget for the compiler ---------------------------------------
    out_isz = jnp.dtype(x.dtype).itemsize
    work = (3 * 2 * tf * H * 2 +           # weight tiles, double-buffered
            2 * ts * H * 2 +               # x tiles
            2 * ts * H * out_isz +         # out tiles
            2 * ts * max(E, 128) * 4 +     # route tiles (lane-padded)
            ts * H * 4 + ts * 128 * 4)     # acc + col scratch
    vmem_limit = int(min(110 * 2**20, max(32 * 2**20, int(work * 1.6))))

    out = pl.pallas_call(
        _moe_kernel,
        out_shape=jax.ShapeDtypeStruct((S_pad, H), x.dtype),
        grid_spec=pltpu.PrefetchScalarGridSpec(
            num_scalar_prefetch=2,
            grid=(ns, n_slots, nf),
            in_specs=[
                pl.BlockSpec((ts, H), tok_map),           # x (bf16)
                pl.BlockSpec((None, H, tf), w13_map),     # w1t[e] (H, tf)
                pl.BlockSpec((None, H, tf), w13_map),     # w3t[e] (H, tf)
                pl.BlockSpec((None, tf, H), w2_map),      # w2t[e] (tf, H)
                pl.BlockSpec((ts, E), tok_map),           # route (f32)
            ],
            out_specs=pl.BlockSpec((ts, H), tok_map),
            scratch_shapes=[pltpu.VMEM((ts, H), jnp.float32),
                            pltpu.VMEM((ts, 1), jnp.float32)],
        ),
        compiler_params=pltpu.CompilerParams(
            dimension_semantics=("parallel", "arbitrary", "arbitrary"),
            vmem_limit_bytes=vmem_limit,
        ),
    )(order, count, xb, w1t, w3t, w2t, route)

    if S_pad != S:
        out = out[:S]
    # TODO(synk): cross-device all_reduce omitted (process_group.size() == 1).
    return out


def _reference(x, gate_w, w1, w3, w2, top_k):
    """Pure-JAX reference mirroring the PyTorch forward (bf16 weight path)."""
    S, H = x.shape
    E = w1.shape[0]
    logits = x.astype(jnp.float32) @ gate_w.astype(jnp.float32).T
    probs = jax.nn.softmax(logits, axis=-1)
    if top_k < E:
        _, idx = lax.top_k(probs, top_k)
        keep = jnp.zeros_like(probs).at[jnp.arange(S)[:, None], idx].set(1.0)
        probs = probs * keep
    w = probs / probs.sum(axis=-1, keepdims=True)
    xb = x.astype(jnp.bfloat16)
    w1b, w3b, w2b = (jnp.asarray(a, jnp.bfloat16) for a in (w1, w3, w2))
    out = jnp.zeros((S, H), jnp.float32)
    for i in range(E):
        h1 = jnp.dot(xb, w1b[i].T, preferred_element_type=jnp.float32)
        h3 = jnp.dot(xb, w3b[i].T, preferred_element_type=jnp.float32)
        h = (jax.nn.silu(h1) * h3).astype(jnp.bfloat16)
        ho = jnp.dot(h, w2b[i].T, preferred_element_type=jnp.float32)
        out = out + ho * w[:, i][:, None]
    return out.astype(x.dtype)


if __name__ == "__main__":
    # Small, MXU/vreg-friendly shapes consistent with the module.
    S = 8        # sequence length
    H = 128      # hidden_size
    F = 256      # intermediate_size (ffn_dim, single shard)
    E = 8        # num_local_experts
    TOP_K = 2    # num_experts_per_tok

    key = jax.random.PRNGKey(0)
    kx, kg, k1, k3, k2 = jax.random.split(key, 5)
    x = jax.random.normal(kx, (S, H), dtype=jnp.float32)
    gate_w = jax.random.normal(kg, (E, H), dtype=jnp.float32) * 0.05
    w1 = jax.random.normal(k1, (E, F, H), dtype=jnp.float32) * 0.05
    w3 = jax.random.normal(k3, (E, F, H), dtype=jnp.float32) * 0.05
    w2 = jax.random.normal(k2, (E, H, F), dtype=jnp.float32) * 0.05

    # One-time weight preparation (bf16 cast + NN-layouts) outside the hot jit.
    gate_p, w1_p, w3_p, w2_p = prepare_moe_weights(gate_w, w1, w3, w2)

    # tf=128 exercises the F-tiled grid axis (F=256 -> 2 tiles).
    out = dense_moe(x, gate_p, w1_p, w3_p, w2_p, top_k=TOP_K, tf=128)
    out = jax.block_until_ready(out)

    ref = jax.block_until_ready(_reference(x, gate_w, w1, w3, w2, TOP_K))
    np.testing.assert_allclose(np.asarray(out), np.asarray(ref),
                               rtol=2e-2, atol=2e-2)
    print("KERNEL_OK")
</pallas_src>

<mosaic_0001>
module attributes {stable_mosaic.version = 11 : i64} {
  func.func @_moe_kernel(%arg0: i32, %arg1: i32, %arg2: i32, %arg3: memref<8xi32, #tpu.memory_space<smem>>, %arg4: memref<1xi32, #tpu.memory_space<smem>>, %arg5: memref<8x128xbf16, #tpu.memory_space<vmem>>, %arg6: memref<1x128x128xbf16, #tpu.memory_space<vmem>>, %arg7: memref<1x128x128xbf16, #tpu.memory_space<vmem>>, %arg8: memref<1x128x128xbf16, #tpu.memory_space<vmem>>, %arg9: memref<8x8xf32, #tpu.memory_space<vmem>>, %arg10: memref<8x128xf32, #tpu.memory_space<vmem>>, %arg11: memref<8x128xf32, #tpu.memory_space<vmem>>, %arg12: memref<8x1xf32, #tpu.memory_space<vmem>>) attributes {dimension_semantics = [#tpu.dimension_semantics<parallel>, #tpu.dimension_semantics<arbitrary>, #tpu.dimension_semantics<arbitrary>], iteration_bounds = array<i64: 1, 8, 2>, scalar_prefetch = 2 : i64, scratch_operands = 2 : i64, tpu.core_type = #tpu.core_type<tc>, window_params = [{transform_indices = @transform_0, window_bounds = array<i64: 8, 128>}, {transform_indices = @transform_1, window_bounds = array<i64: 1, 128, 128>}, {transform_indices = @transform_2, window_bounds = array<i64: 1, 128, 128>}, {transform_indices = @transform_3, window_bounds = array<i64: 1, 128, 128>}, {transform_indices = @transform_4, window_bounds = array<i64: 8, 8>}, {transform_indices = @transform_5, window_bounds = array<i64: 8, 128>}]} {
    %c0 = arith.constant 0 : index
    %0 = memref.load %arg4[%c0] : memref<1xi32, #tpu.memory_space<smem>>
    %1 = arith.cmpi slt, %arg1, %0 : i32
    %c0_i32 = arith.constant 0 : i32
    %2 = arith.cmpi eq, %arg1, %c0_i32 : i32
    %c0_i32_0 = arith.constant 0 : i32
    %3 = arith.cmpi eq, %arg2, %c0_i32_0 : i32
    %4 = arith.andi %2, %3 : i1
    %5 = arith.extui %4 : i1 to i32
    %c0_i32_1 = arith.constant 0 : i32
    %6 = arith.cmpi ne, %5, %c0_i32_1 : i32
    scf.if %6 {
      %cst = arith.constant 0.000000e+00 : f32
      %18 = vector.broadcast %cst : f32 to vector<8x128xf32>
      %c0_6 = arith.constant 0 : index
      %c0_7 = arith.constant 0 : index
      %19 = vector.load %arg11[%c0_6, %c0_7] : memref<8x128xf32, #tpu.memory_space<vmem>>, vector<8x128xf32>
      tpu.vector_store %arg11[%c0_6, %c0_7], %18 {strides = array<i32>} : memref<8x128xf32, #tpu.memory_space<vmem>>, vector<8x128xf32>,
    } else {
    }
    %c0_i32_2 = arith.constant 0 : i32
    %7 = arith.cmpi eq, %arg2, %c0_i32_2 : i32
    %8 = arith.andi %1, %7 : i1
    %9 = arith.extui %8 : i1 to i32
    %c0_i32_3 = arith.constant 0 : i32
    %10 = arith.cmpi ne, %9, %c0_i32_3 : i32
    scf.if %10 {
      %18 = arith.index_cast %arg1 : i32 to index
      %19 = memref.load %arg3[%18] : memref<8xi32, #tpu.memory_space<smem>>
      %20 = tpu.iota {dimensions = array<i32: 1>} : vector<8x8xi32>
      %21 = vector.broadcast %19 : i32 to vector<8x8xi32>
      %22 = arith.cmpi eq, %20, %21 : vector<8x8xi32>
      %c0_6 = arith.constant 0 : index
      %c0_7 = arith.constant 0 : index
      %23 = vector.load %arg9[%c0_6, %c0_7] : memref<8x8xf32, #tpu.memory_space<vmem>>, vector<8x8xf32>
      %cst = arith.constant 0.000000e+00 : f32
      %24 = vector.broadcast %cst : f32 to vector<8x8xf32>
      %25 = arith.select %22, %23, %24 : vector<8x8xi1>, vector<8x8xf32>
      %cst_8 = arith.constant dense<0.000000e+00> : vector<8xf32>
      %26 = vector.multi_reduction <add>, %25, %cst_8 [1] : vector<8x8xf32> to vector<8xf32>
      %27 = vector.shape_cast %26 : vector<8xf32> to vector<8x1xf32>
      %c0_9 = arith.constant 0 : index
      %c0_10 = arith.constant 0 : index
      %28 = vector.load %arg12[%c0_9, %c0_10] : memref<8x1xf32, #tpu.memory_space<vmem>>, vector<8x1xf32>
      tpu.vector_store %arg12[%c0_9, %c0_10], %27 {strides = array<i32>} : memref<8x1xf32, #tpu.memory_space<vmem>>, vector<8x1xf32>,
    } else {
    }
    %11 = arith.extui %1 : i1 to i32
    %c0_i32_4 = arith.constant 0 : i32
    %12 = arith.cmpi ne, %11, %c0_i32_4 : i32
    scf.if %12 {
      %c0_6 = arith.constant 0 : index
      %c0_7 = arith.constant 0 : index
      %18 = vector.load %arg5[%c0_6, %c0_7] : memref<8x128xbf16, #tpu.memory_space<vmem>>, vector<8x128xbf16>
      %c0_8 = arith.constant 0 : index
      %c0_9 = arith.constant 0 : index
      %c0_10 = arith.constant 0 : index
      %19 = vector.load %arg6[%c0_8, %c0_9, %c0_10] : memref<1x128x128xbf16, #tpu.memory_space<vmem>>, vector<1x128x128xbf16>
      %20 = vector.shape_cast %19 : vector<1x128x128xbf16> to vector<128x128xbf16>
      %cst = arith.constant dense<0.000000e+00> : vector<8x128xf32>
      %21 = tpu.matmul %18, %20, %cst {dimension_numbers = #tpu.dot_dimension_numbers<[1], [0], [0], [1], [0, 0, 1, 1], [], []>} : vector<8x128xbf16>, vector<128x128xbf16>, vector<8x128xf32> -> vector<8x128xf32>
      %c0_11 = arith.constant 0 : index
      %c0_12 = arith.constant 0 : index
      %c0_13 = arith.constant 0 : index
      %22 = vector.load %arg7[%c0_11, %c0_12, %c0_13] : memref<1x128x128xbf16, #tpu.memory_space<vmem>>, vector<1x128x128xbf16>
      %23 = vector.shape_cast %22 : vector<1x128x128xbf16> to vector<128x128xbf16>
      %cst_14 = arith.constant dense<0.000000e+00> : vector<8x128xf32>
      %24 = tpu.matmul %18, %23, %cst_14 {dimension_numbers = #tpu.dot_dimension_numbers<[1], [0], [0], [1], [0, 0, 1, 1], [], []>} : vector<8x128xbf16>, vector<128x128xbf16>, vector<8x128xf32> -> vector<8x128xf32>
      %25 = arith.negf %21 : vector<8x128xf32>
      %26 = math.exp %25 : vector<8x128xf32>
      %cst_15 = arith.constant 1.000000e+00 : f32
      %27 = vector.broadcast %cst_15 : f32 to vector<8x128xf32>
      %28 = arith.addf %27, %26 : vector<8x128xf32>
      %29 = arith.divf %27, %28 : vector<8x128xf32>
      %30 = arith.mulf %21, %29 : vector<8x128xf32>
      %31 = arith.mulf %30, %24 : vector<8x128xf32>
      %c0_16 = arith.constant 0 : index
      %c0_17 = arith.constant 0 : index
      %32 = vector.load %arg12[%c0_16, %c0_17] : memref<8x1xf32, #tpu.memory_space<vmem>>, vector<8x1xf32>
      %33 = vector.broadcast %32 : vector<8x1xf32> to vector<8x128xf32>
      %34 = arith.mulf %31, %33 : vector<8x128xf32>
      %35 = arith.truncf %34 : vector<8x128xf32> to vector<8x128xbf16>
      %c0_18 = arith.constant 0 : index
      %c0_19 = arith.constant 0 : index
      %36 = vector.load %arg11[%c0_18, %c0_19] : memref<8x128xf32, #tpu.memory_space<vmem>>, vector<8x128xf32>
      %c0_20 = arith.constant 0 : index
      %c0_21 = arith.constant 0 : index
      %c0_22 = arith.constant 0 : index
      %37 = vector.load %arg8[%c0_20, %c0_21, %c0_22] : memref<1x128x128xbf16, #tpu.memory_space<vmem>>, vector<1x128x128xbf16>
      %38 = vector.shape_cast %37 : vector<1x128x128xbf16> to vector<128x128xbf16>
      %cst_23 = arith.constant dense<0.000000e+00> : vector<8x128xf32>
      %39 = tpu.matmul %35, %38, %cst_23 {dimension_numbers = #tpu.dot_dimension_numbers<[1], [0], [0], [1], [0, 0, 1, 1], [], []>} : vector<8x128xbf16>, vector<128x128xbf16>, vector<8x128xf32> -> vector<8x128xf32>
      %40 = arith.addf %36, %39 : vector<8x128xf32>
      %c0_24 = arith.constant 0 : index
      %c0_25 = arith.constant 0 : index
      %41 = vector.load %arg11[%c0_24, %c0_25] : memref<8x128xf32, #tpu.memory_space<vmem>>, vector<8x128xf32>
      tpu.vector_store %arg11[%c0_24, %c0_25], %40 {strides = array<i32>} : memref<8x128xf32, #tpu.memory_space<vmem>>, vector<8x128xf32>,
    } else {
    }
    %c7_i32 = arith.constant 7 : i32
    %13 = arith.cmpi eq, %arg1, %c7_i32 : i32
    %c1_i32 = arith.constant 1 : i32
    %14 = arith.cmpi eq, %arg2, %c1_i32 : i32
    %15 = arith.andi %13, %14 : i1
    %16 = arith.extui %15 : i1 to i32
    %c0_i32_5 = arith.constant 0 : i32
    %17 = arith.cmpi ne, %16, %c0_i32_5 : i32
    scf.if %17 {
      %c0_6 = arith.constant 0 : index
      %c0_7 = arith.constant 0 : index
      %18 = vector.load %arg11[%c0_6, %c0_7] : memref<8x128xf32, #tpu.memory_space<vmem>>, vector<8x128xf32>
      %c0_8 = arith.constant 0 : index
      %c0_9 = arith.constant 0 : index
      %19 = vector.load %arg10[%c0_8, %c0_9] : memref<8x128xf32, #tpu.memory_space<vmem>>, vector<8x128xf32>
      tpu.vector_store %arg10[%c0_8, %c0_9], %18 {strides = array<i32>} : memref<8x128xf32, #tpu.memory_space<vmem>>, vector<8x128xf32>,
    } else {
    }
    return
  }
  func.func @transform_0(%arg0: i32, %arg1: i32, %arg2: i32, %arg3: memref<8xi32, #tpu.memory_space<smem>>, %arg4: memref<1xi32, #tpu.memory_space<smem>>) -> (i32, i32) {
    %c0_i32 = arith.constant 0 : i32
    %c0_i32_0 = arith.constant 0 : i32
    return %arg0, %c0_i32 : i32, i32
  }
  func.func @transform_1(%arg0: i32, %arg1: i32, %arg2: i32, %arg3: memref<8xi32, #tpu.memory_space<smem>>, %arg4: memref<1xi32, #tpu.memory_space<smem>>) -> (i32, i32, i32) {
    %c0 = arith.constant 0 : index
    %0 = memref.load %arg4[%c0] : memref<1xi32, #tpu.memory_space<smem>>
    %c1_i32 = arith.constant 1 : i32
    %1 = arith.subi %0, %c1_i32 : i32
    %2 = arith.minsi %arg1, %1 : i32
    %c0_i32 = arith.constant 0 : i32
    %3 = arith.maxsi %2, %c0_i32 : i32
    %4 = arith.index_cast %3 : i32 to index
    %5 = memref.load %arg3[%4] : memref<8xi32, #tpu.memory_space<smem>>
    %6 = arith.cmpi slt, %arg1, %0 : i32
    %c1_i32_0 = arith.constant 1 : i32
    %7 = arith.select %6, %arg2, %c1_i32_0 : i32
    %c0_i32_1 = arith.constant 0 : i32
    %c0_i32_2 = arith.constant 0 : i32
    return %5, %c0_i32_1, %7 : i32, i32, i32
  }
  func.func @transform_2(%arg0: i32, %arg1: i32, %arg2: i32, %arg3: memref<8xi32, #tpu.memory_space<smem>>, %arg4: memref<1xi32, #tpu.memory_space<smem>>) -> (i32, i32, i32) {
    %c0 = arith.constant 0 : index
    %0 = memref.load %arg4[%c0] : memref<1xi32, #tpu.memory_space<smem>>
    %c1_i32 = arith.constant 1 : i32
    %1 = arith.subi %0, %c1_i32 : i32
    %2 = arith.minsi %arg1, %1 : i32
    %c0_i32 = arith.constant 0 : i32
    %3 = arith.maxsi %2, %c0_i32 : i32
    %4 = arith.index_cast %3 : i32 to index
    %5 = memref.load %arg3[%4] : memref<8xi32, #tpu.memory_space<smem>>
    %6 = arith.cmpi slt, %arg1, %0 : i32
    %c1_i32_0 = arith.constant 1 : i32
    %7 = arith.select %6, %arg2, %c1_i32_0 : i32
    %c0_i32_1 = arith.constant 0 : i32
    %c0_i32_2 = arith.constant 0 : i32
    return %5, %c0_i32_1, %7 : i32, i32, i32
  }
  func.func @transform_3(%arg0: i32, %arg1: i32, %arg2: i32, %arg3: memref<8xi32, #tpu.memory_space<smem>>, %arg4: memref<1xi32, #tpu.memory_space<smem>>) -> (i32, i32, i32) {
    %c0 = arith.constant 0 : index
    %0 = memref.load %arg4[%c0] : memref<1xi32, #tpu.memory_space<smem>>
    %c1_i32 = arith.constant 1 : i32
    %1 = arith.subi %0, %c1_i32 : i32
    %2 = arith.minsi %arg1, %1 : i32
    %c0_i32 = arith.constant 0 : i32
    %3 = arith.maxsi %2, %c0_i32 : i32
    %4 = arith.index_cast %3 : i32 to index
    %5 = memref.load %arg3[%4] : memref<8xi32, #tpu.memory_space<smem>>
    %6 = arith.cmpi slt, %arg1, %0 : i32
    %c1_i32_0 = arith.constant 1 : i32
    %7 = arith.select %6, %arg2, %c1_i32_0 : i32
    %c0_i32_1 = arith.constant 0 : i32
    %c0_i32_2 = arith.constant 0 : i32
    return %5, %7, %c0_i32_1 : i32, i32, i32
  }
  func.func @transform_4(%arg0: i32, %arg1: i32, %arg2: i32, %arg3: memref<8xi32, #tpu.memory_space<smem>>, %arg4: memref<1xi32, #tpu.memory_space<smem>>) -> (i32, i32) {
    %c0_i32 = arith.constant 0 : i32
    %c0_i32_0 = arith.constant 0 : i32
    return %arg0, %c0_i32 : i32, i32
  }
  func.func @transform_5(%arg0: i32, %arg1: i32, %arg2: i32, %arg3: memref<8xi32, #tpu.memory_space<smem>>, %arg4: memref<1xi32, #tpu.memory_space<smem>>) -> (i32, i32) {
    %c0_i32 = arith.constant 0 : i32
    %c0_i32_0 = arith.constant 0 : i32
    return %arg0, %c0_i32 : i32, i32
  }
}

</mosaic_0001>

<bundles_post_ra>
// kernel: dense_moe.1
= control target key start
LH: loop header
LB: loop body
LE: loop exit
PB: predicated region body
PF: predicated region fallthrough
CT: control target
= control target key end

     0   :  { %s1919_s0 = inlined_call_operand.vmem [shape: s32[8], index: 0, kind: input, shape index: {}]   ;;  %s1920_s1 = inlined_call_operand.<no memory space> [shape: s32[1], index: 1, kind: input, shape index: {}]   ;;  %s1921_s2 = inlined_call_operand.vmem [shape: bf16[8,128], index: 2, kind: input, shape index: {}]   ;;  %s1922_s3 = inlined_call_operand.vmem [shape: bf16[8,128,256], index: 3, kind: input, shape index: {}]   ;;  %s1923_s4 = inlined_call_operand.vmem [shape: bf16[8,128,256], index: 4, kind: input, shape index: {}]   ;;  %s1924_s5 = inlined_call_operand.vmem [shape: bf16[8,256,128], index: 5, kind: input, shape index: {}]   ;;  %s1925_s6 = inlined_call_operand.vmem [shape: f32[8,8], index: 6, kind: input, shape index: {}]   ;;  %s1926_s7 = inlined_call_operand.hbm [shape: f32[8,128], index: 7, kind: output, shape index: {}]  }
   0x1   :  { %1929 = sst [smem:[#allocation14_spill]] %s1921_s2  ;;  %s12_s26 = sshll.u32 %s1919_s0, 4  ;;  %s13_s26 = int_to_ptr.vmem [resolvable:$true] %s12_s26 }
   0x2   :  { %1930 = sst [smem:[#allocation15_spill]] %s1924_s5  ;;  %s1446_s29 = scalar_lea.vmem %s13_s26, 16 }
   0x3   :  { %1931 = sst [smem:[#allocation16_spill]] %s1925_s6  ;;  %p1447_p0 = scmp.ne.s32.totalorder %s13_s26, %s1446_s29 }
   0x4   :  { %1932 = sst [smem:[#allocation17_spill]] %s1926_s7  ;;  %p1451_p1 = scmp.lt.s32.totalorder %s13_s26, %s13_s26 }
   0x5   :  { %16 = sst [smem:[#allocation6]] %s1920_s1  ;;  %p1452_p2 = scmp.lt.s32.totalorder %s1446_s29, %s1446_s29 }
   0x7   :  { %p1453_p3 = por %p1452_p2, %p1451_p1 }
   0x9   :  { %p1454_p4 = pnand %p1453_p3, %p1447_p0 }
   0xb   :  { %1457 = shalt.err (!%p1454_p4)  }
   0xc   :  { %s1562_s30 = smov [#allocation5]  }
   0xd   :  { %15 = dma.vmem_to_smem %s13_s26, 16, %s1562_s30, [#allocation4] }
   0xe   :  { %1520 = dma.done.wait [#allocation4], 16 }
   0xf   :  { %1521 = vsyncadd [#allocation4], 4294967280 }
  0x10   :  { %18 = sfence }
  0x11   :  { %19 = vsyncpa [#allocation10], 0  ;;  %s1614_s8 = smov 0   ;;  %s1616_s0 = smov 0  }
  0x12   :  { %s1618_s9 = smov 0   ;;  %s1620_s1 = smov 0  }
  0x13   :  { %s1622_s10 = smov 0   ;;  %s1624_s11 = smov 0  }
  0x14   :  { %s1626_s12 = smov 0   ;;  %s1628_s13 = smov 0  }
  0x15   :  { %s1630_s14 = smov 0  }
  0x16 LB: > { %s37_s16 = sadd.s32 1, %s1552_s12  ;;  %s40_s17 = sadd.s32 1, %s1556_s13  ;;  %s1560_s14 = sphi %s1630_s14, %s25_s14   ;;  %s1556_s13 = sphi %s1628_s13, %s1951_s13   ;;  %s1552_s12 = sphi %s1626_s12, %s1950_s12   ;;  %s1548_s11 = sphi %s1624_s11, %s1949_s11   ;;  %s1544_s10 = sphi %s1622_s10, %s1948_s10   ;;  %s1540_s1 = sphi %s1620_s1, %s1947_s1   ;;  %s1536_s9 = sphi %s1618_s9, %s1946_s9   ;;  %s1532_s0 = sphi %s1616_s0, %s1945_s0   ;;  %s1528_s8 = sphi %s1614_s8, %s1944_s8  }
  0x17   : > { %p38_p5 = scmp.ge.s32.totalorder %s37_s16, 2  ;;  %s74_s18 = sld [smem:[#allocation6]] }
  0x18   : > { %p104_p6 = scmp.ne.s32.totalorder %s1540_s1, %s1536_s9  ;;  %p105_p7 = scmp.eq.s32.totalorder %s1560_s14, 0 }
  0x19   : > { %s1953_s16 = smov (%p38_p5, %s37_s16), 0  ;;  %s1955_s17 = smov (!%p38_p5, %s40_s17), %s1556_s13 }
  0x1a   : > { %p42_p8 = scmp.ge.s32.totalorder %s1955_s17, 8  ;;  %p1670_p9 = por %p105_p7, %p104_p6 }
  0x1b   : > { %p150_p10 = scmp.ne.s32.totalorder %s1532_s0, %s1528_s8  ;;  %s143_s6 = sadd.s32 1, %s1532_s0 }
  0x1c   : > { %s1957_s17 = smov (%p42_p8, %s1955_s17), 0  ;;  %p1200_p6 = scmp.ge.s32.totalorder %s1560_s14, 16 }
  0x1d   : > { %1934 = sst [smem:[#allocation13_spill]] %s1957_s17  ;;  %s1191_s20 = sadd.s32 4294967295, %s74_s18 }
  0x1e   : > { %p81_p11 = scmp.lt.s32.totalorder %s1556_s13, %s74_s18  ;;  %p76_p12 = scmp.lt.s32.totalorder %s1556_s13, %s1191_s20 }
  0x1f   : > { %p85_p13 = scmp.lt.s32.totalorder %s1957_s17, %s1191_s20  ;;  %p90_p1 = scmp.lt.s32.totalorder %s1957_s17, %s74_s18 }
  0x20   : > { %s82_s21 = scalar_select %p81_p11, %s1552_s12, 1 }
  0x21   : > { %s77_s22 = scalar_select %p76_p12, %s1556_s13, %s1191_s20 }
  0x22   : > { %s86_s23 = scalar_select %p85_p13, %s1957_s17, %s1191_s20 }
  0x23   : > { %p78_p0 = scmp.gt.s32.totalorder %s77_s22, 0  ;;  %p1690_p3 = por %p150_p10, %p105_p7 }
  0x24   : > { %p87_p2 = scmp.gt.s32.totalorder %s86_s23, 0  ;;  %s97_s20 = sadd.s32 1, %s1540_s1 }
  0x25   : > { %s1959_s22 = smov (!%p78_p0, %s77_s22), 0 }
  0x26   : > { %s1961_s23 = smov (!%p87_p2, %s86_s23), 0  ;;  %s80_s24 = sld [smem:[#allocation5 + %s1959_s22]] }
  0x27   : > { %s89_s25 = sld [smem:[#allocation5 + %s1961_s23]] }
  0x28   : > { %s91_s27 = scalar_select %p90_p1, %s1953_s16, 1 }
  0x29   : > { %s126_s18 = sld [smem:[#allocation5 + %s1959_s22]] }
  0x2a   : > { %s93_s28 = ssub.s32 %s82_s21, %s91_s27  ;;  %s135_s17 = sld [smem:[#allocation5 + %s1961_s23]] }
  0x2d   : > { %s92_s29 = ssub.s32 %s80_s24, %s89_s25 }
  0x2e   : > { %s94_s30 = sor.u32 %s93_s28, %s92_s29 }
  0x2f   : > { %p95_p4 = scmp.eq.s32.totalorder %s94_s30, 0  ;;  %288 = sbr.rel (%p1200_p6) target bundleno = 124 (0x7c), region = 24 }
  0x30   : > { %s138_s7 = ssub.s32 %s126_s18, %s135_s17 }
  0x31   : > { %s1697_s15 = scalar_select %p95_p4, %s1540_s1, %s97_s20  }
  0x32   : > { %s140_s2 = sor.u32 %s138_s7, %s93_s28 }
  0x33   : > { %p141_p5 = scmp.eq.s32.totalorder %s140_s2, 0 }
  0x35   : > { %s1701_s5 = scalar_select %p141_p5, %s1532_s0, %s143_s6  }
  0x36   : > { %291 = sbr.rel (!%p1670_p9) target bundleno = 89 (0x59), region = 28  ;;  %s296_s21 = sld [smem:[#allocation6]] (%p1670_p9) }
  0x37   : > { %s293_s6 = sand.u32 (%p1670_p9), 1, %s1540_s1  }
  0x38   : > { %s1201_s23 = sshll.u32 (%p1670_p9), %s293_s6, 6 }
  0x39   : > { %s295_s30 = scalar_lea.vmem (%p1670_p9), [#allocation7], %s1201_s23 }
  0x3c   : > { %s1202_s22 = sadd.s32 (%p1670_p9), 4294967295, %s296_s21  ;;  %p303_p10 = scmp.lt.s32.totalorder (%p1670_p9), %s1556_s13, %s296_s21 }
  0x3d   : > { %p298_p7 = scmp.lt.s32.totalorder %s1556_s13, %s1202_s22 }
  0x3e   : > { %s304_s7 = scalar_select %p303_p10, %s1552_s12, 1 }
  0x3f   : > { %s299_s17 = scalar_select %p298_p7, %s1556_s13, %s1202_s22 }
  0x41   : > { %p300_p8 = scmp.gt.s32.totalorder %s299_s17, 0 }
  0x43   : > { %s1963_s17 = smov (!%p300_p8, %s299_s17), 0 }
  0x44   : > { %s302_s2 = sld [smem:[#allocation5 + %s1963_s17]] }
  0x4a   : > { %s1203_s24 = sshll.u32 %s302_s2, 5 }
  0x4b   : > { %s306_s25 = sadd.s32 %s1203_s24, %s304_s7 }
  0x4c   : > { %s1204_s19 = sshll.u32 %s306_s25, 2 }
  0x4d   : > { %s1714_s29 = scalar_lea.vmem %s1922_s3, %s1204_s19 }
  0x4e   : > { %v324_v0 = vld [vmem:[%s1714_s29] sm:$0xf]  ;;  %v326_v1 = vld [vmem:[%s1714_s29 + $0x8] sm:$0xf]  ;;  %v328_v2 = vld [vmem:[%s1714_s29 + $0x10] sm:$0xf] }
  0x4f   : > { %325 = vst [vmem:[%s295_s30] sm:$0xf] %v324_v0  ;;  %327 = vst [vmem:[%s295_s30 + $0x4] sm:$0xf] %v326_v1  ;;  %v330_v3 = vld [vmem:[%s1714_s29 + $0x18] sm:$0xf] }
  0x50   : > { %329 = vst [vmem:[%s295_s30 + $0x8] sm:$0xf] %v328_v2  ;;  %v332_v4 = vld [vmem:[%s1714_s29 + $0x20] sm:$0xf]  ;;  %v334_v5 = vld [vmem:[%s1714_s29 + $0x28] sm:$0xf] }
  0x51   : > { %331 = vst [vmem:[%s295_s30 + $0xc] sm:$0xf] %v330_v3  ;;  %333 = vst [vmem:[%s295_s30 + $0x10] sm:$0xf] %v332_v4  ;;  %v336_v6 = vld [vmem:[%s1714_s29 + $0x30] sm:$0xf] }
  0x52   : > { %335 = vst [vmem:[%s295_s30 + $0x14] sm:$0xf] %v334_v5  ;;  %v338_v7 = vld [vmem:[%s1714_s29 + $0x38] sm:$0xf]  ;;  %v340_v8 = vld [vmem:[%s1714_s29 + $0x40] sm:$0xf] }
  0x53   : > { %337 = vst [vmem:[%s295_s30 + $0x18] sm:$0xf] %v336_v6  ;;  %339 = vst [vmem:[%s295_s30 + $0x1c] sm:$0xf] %v338_v7  ;;  %v342_v9 = vld [vmem:[%s1714_s29 + $0x48] sm:$0xf] }
  0x54   : > { %341 = vst [vmem:[%s295_s30 + $0x20] sm:$0xf] %v340_v8  ;;  %v344_v10 = vld [vmem:[%s1714_s29 + $0x50] sm:$0xf]  ;;  %v346_v11 = vld [vmem:[%s1714_s29 + $0x58] sm:$0xf] }
  0x55   : > { %343 = vst [vmem:[%s295_s30 + $0x24] sm:$0xf] %v342_v9  ;;  %345 = vst [vmem:[%s295_s30 + $0x28] sm:$0xf] %v344_v10  ;;  %v348_v12 = vld [vmem:[%s1714_s29 + $0x60] sm:$0xf] }
  0x56   : > { %347 = vst [vmem:[%s295_s30 + $0x2c] sm:$0xf] %v346_v11  ;;  %v350_v13 = vld [vmem:[%s1714_s29 + $0x68] sm:$0xf]  ;;  %v352_v14 = vld [vmem:[%s1714_s29 + $0x70] sm:$0xf] }
  0x57   : > { %349 = vst [vmem:[%s295_s30 + $0x30] sm:$0xf] %v348_v12  ;;  %351 = vst [vmem:[%s295_s30 + $0x34] sm:$0xf] %v350_v13  ;;  %v354_v15 = vld [vmem:[%s1714_s29 + $0x78] sm:$0xf] }
  0x58   : > { %353 = vst [vmem:[%s295_s30 + $0x38] sm:$0xf] %v352_v14  ;;  %355 = vst [vmem:[%s295_s30 + $0x3c] sm:$0xf] %v354_v15 }
  0x59 PF: > { %410 = sbr.rel (!%p1690_p3) target bundleno = 124 (0x7c), region = 69  ;;  %s415_s20 = sld [smem:[#allocation6]] (%p1690_p3) }
  0x5a   : > { %s412_s17 = sand.u32 (%p1690_p3), 1, %s1532_s0  }
  0x5b   : > { %s1205_s6 = sshll.u32 (%p1690_p3), %s412_s17, 6 }
  0x5c   : > { %s414_s27 = scalar_lea.vmem (%p1690_p3), [#allocation8], %s1205_s6 }
  0x5f   : > { %s1206_s18 = sadd.s32 (%p1690_p3), 4294967295, %s415_s20  ;;  %p422_p12 = scmp.lt.s32.totalorder (%p1690_p3), %s1556_s13, %s415_s20 }
  0x60   : > { %p417_p9 = scmp.lt.s32.totalorder %s1556_s13, %s1206_s18 }
  0x61   : > { %s423_s2 = scalar_select %p422_p12, %s1552_s12, 1 }
  0x62   : > { %s418_s21 = scalar_select %p417_p9, %s1556_s13, %s1206_s18 }
  0x64   : > { %p419_p11 = scmp.gt.s32.totalorder %s418_s21, 0 }
  0x66   : > { %s1965_s21 = smov (!%p419_p11, %s418_s21), 0 }
  0x67   : > { %s421_s22 = sld [smem:[#allocation5 + %s1965_s21]] }
  0x6d   : > { %s1207_s7 = sshll.u32 %s421_s22, 5 }
  0x6e   : > { %s425_s23 = sadd.s32 %s1207_s7, %s423_s2 }
  0x6f   : > { %s1208_s26 = sshll.u32 %s425_s23, 2 }
  0x70   : > { %s1742_s19 = scalar_lea.vmem %s1923_s4, %s1208_s26 }
  0x71   : > { %v443_v16 = vld [vmem:[%s1742_s19] sm:$0xf]  ;;  %v445_v17 = vld [vmem:[%s1742_s19 + $0x8] sm:$0xf]  ;;  %v447_v18 = vld [vmem:[%s1742_s19 + $0x10] sm:$0xf] }
  0x72   : > { %444 = vst [vmem:[%s414_s27] sm:$0xf] %v443_v16  ;;  %446 = vst [vmem:[%s414_s27 + $0x4] sm:$0xf] %v445_v17  ;;  %v449_v19 = vld [vmem:[%s1742_s19 + $0x18] sm:$0xf] }
  0x73   : > { %448 = vst [vmem:[%s414_s27 + $0x8] sm:$0xf] %v447_v18  ;;  %v451_v20 = vld [vmem:[%s1742_s19 + $0x20] sm:$0xf]  ;;  %v453_v21 = vld [vmem:[%s1742_s19 + $0x28] sm:$0xf] }
  0x74   : > { %450 = vst [vmem:[%s414_s27 + $0xc] sm:$0xf] %v449_v19  ;;  %452 = vst [vmem:[%s414_s27 + $0x10] sm:$0xf] %v451_v20  ;;  %v455_v22 = vld [vmem:[%s1742_s19 + $0x30] sm:$0xf] }
  0x75   : > { %454 = vst [vmem:[%s414_s27 + $0x14] sm:$0xf] %v453_v21  ;;  %v457_v23 = vld [vmem:[%s1742_s19 + $0x38] sm:$0xf]  ;;  %v459_v24 = vld [vmem:[%s1742_s19 + $0x40] sm:$0xf] }
  0x76   : > { %456 = vst [vmem:[%s414_s27 + $0x18] sm:$0xf] %v455_v22  ;;  %458 = vst [vmem:[%s414_s27 + $0x1c] sm:$0xf] %v457_v23  ;;  %v461_v25 = vld [vmem:[%s1742_s19 + $0x48] sm:$0xf] }
  0x77   : > { %460 = vst [vmem:[%s414_s27 + $0x20] sm:$0xf] %v459_v24  ;;  %v463_v26 = vld [vmem:[%s1742_s19 + $0x50] sm:$0xf]  ;;  %v465_v27 = vld [vmem:[%s1742_s19 + $0x58] sm:$0xf] }
  0x78   : > { %462 = vst [vmem:[%s414_s27 + $0x24] sm:$0xf] %v461_v25  ;;  %464 = vst [vmem:[%s414_s27 + $0x28] sm:$0xf] %v463_v26  ;;  %v467_v28 = vld [vmem:[%s1742_s19 + $0x60] sm:$0xf] }
  0x79   : > { %466 = vst [vmem:[%s414_s27 + $0x2c] sm:$0xf] %v465_v27  ;;  %v469_v29 = vld [vmem:[%s1742_s19 + $0x68] sm:$0xf]  ;;  %v471_v30 = vld [vmem:[%s1742_s19 + $0x70] sm:$0xf] }
  0x7a   : > { %468 = vst [vmem:[%s414_s27 + $0x30] sm:$0xf] %v467_v28  ;;  %470 = vst [vmem:[%s414_s27 + $0x34] sm:$0xf] %v469_v29  ;;  %v473_v31 = vld [vmem:[%s1742_s19 + $0x78] sm:$0xf] }
  0x7b   : > { %472 = vst [vmem:[%s414_s27 + $0x38] sm:$0xf] %v471_v30  ;;  %474 = vst [vmem:[%s414_s27 + $0x3c] sm:$0xf] %v473_v31 }
  0x7c PF: > { %p1209_p13 = scmp.ge.s32.totalorder %s1560_s14, 1  ;;  %p559_p0 = scmp.lt.s32.totalorder %s1560_s14, 17 }
  0x7e   : > { %p560_p1 = pnand %p1209_p13, %p559_p0 }
  0x7f   : > { %s566_s28 = sand.u32 (!%p560_p1), 1, %s1536_s9   ;;  %s573_s29 = sand.u32 (!%p560_p1), 1, %s1528_s8  }
  0x80   : > { %563 = sbr.rel (%p560_p1) target bundleno = 847 (0x34f), region = 114  ;;  %s1210_s30 = sshll.u32 (!%p560_p1), %s566_s28, 6 }
  0x81   : > { %s1211_s20 = sshll.u32 (!%p560_p1), %s573_s29, 6  ;;  %s1764_s18 = sld [smem:[#allocation6]] (!%p560_p1) }
  0x82   : > { %p682_p2 = scmp.eq.s32.totalorder (!%p560_p1), %s1548_s11, 0  ;;  %p683_p3 = scmp.eq.s32.totalorder (!%p560_p1), %s1544_s10, 0 }
  0x83   : > { %s1937_s25 = sld [smem:[#allocation15_spill]] (!%p560_p1)  ;;  %s1788_s27 = scalar_lea.vmem (!%p560_p1), [#allocation7], %s1210_s30 }
  0x84   : > { %p1770_p4 = pnand (!%p560_p1), %p683_p3, %p682_p2  ;;  %s1790_s28 = scalar_lea.vmem (!%p560_p1), [#allocation8], %s1211_s20 }
  0x87   : > { %s1212_s22 = sadd.s32 4294967295, %s1764_s18  ;;  %p654_p5 = scmp.lt.s32.totalorder %s1548_s11, %s1764_s18  ;;  %v1563_v32 = vmov (!%p1770_p4), 0.0  }
  0x88   : > { %p649_p6 = scmp.lt.s32.totalorder %s1548_s11, %s1212_s22  ;;  %688 = vst [vmem:[#allocation2] sm:$0xff] (!%p1770_p4), %v1563_v32 }
  0x89   : > { %s655_s8 = scalar_select %p654_p5, %s1544_s10, 1 }
  0x8a   : > { %s650_s17 = scalar_select %p649_p6, %s1548_s11, %s1212_s22 }
  0x8b   : > { %s1213_s2 = sshll.u32 %s655_s8, 4 }
  0x8c   : > { %p651_p7 = scmp.gt.s32.totalorder %s650_s17, 0  ;;  %p659_p8 = scmp.lt.s32.totalorder %s1213_s2, 31 }
  0x8e   : > { %s1967_s17 = smov (!%p651_p7, %s650_s17), 0  ;;  %s1969_s2 = smov (!%p659_p8, %s1213_s2), 31 }
  0x8f   : > { %s653_s9 = sld [smem:[#allocation5 + %s1967_s17]] }
  0x95   : > { %p657_p10 = scmp.lt.s32.totalorder %s653_s9, 7  ;;  %687 = sbr.rel (%p1770_p4) target bundleno = 156 (0x9c), region = 126 }
  0x97   : > { %s1971_s9 = smov (!%p657_p10, %s653_s9), 7 }
  0x98   : > { %s1214_s6 = sshll.u32 %s1971_s9, 5 }
  0x99   : > { %s662_s7 = sadd.s32 %s1214_s6, %s1969_s2 }
  0x9a   : > { %s1215_s23 = sshll.u32 %s662_s7, 2 }
  0x9b   : > { %s1786_s19 = scalar_lea.vmem %s1937_s25, %s1215_s23 }
  0x9c PF: > { %p689_p9 = pnand %p683_p3, %p654_p5 }
  0x9d   : > { %s693_s29 = sld [smem:[#allocation5 + %s1548_s11]] (!%p689_p9)  ;;  %v694_v33 = vlaneseq (!%p689_p9)  ;;  %vm700_vm0 = vcmask (!%p689_p9), 64512   ;;  %vm704_vm2 = vcmask (!%p689_p9), 7168  }
  0x9e   : > { %692 = sbr.rel (%p689_p9) target bundleno = 310 (0x136), region = 130  ;;  %s1938_s22 = sld [smem:[#allocation16_spill]] (!%p689_p9) }
  0x9f   : > { %v695_v34 = vand.u32 (!%p689_p9), 127, %v694_v33 }
  0xa3   : > { %v696_v36 = vstv (!%p689_p9), %s693_s29 }
  0xa4   : > { %v698_v35 = vld [vmem:[%s1938_s22] sm:$0xff] (!%p689_p9)  ;;  %vm697_vm1 = vcmp.eq.s32.totalorder (!%p689_p9), %v695_v34, %v696_v36 }
  0xa5   : > { %v699_v37 = vsel %vm697_vm1, %v698_v35, 0.0 }
  0xa6   : > { %v701_v38 = vsel %vm700_vm0, %v699_v37, 0.0 }
  0xa7   : > { %702 = vadd.xlane.f32.xlu0 %v701_v38 }
 0x134   : > { %v703_v39 = vpop.xlane.xlu0 %702 }
 0x135   : > { %705 = vst.msk [vmem:[#allocation3] sm:$0xff] %vm704_vm2, %v703_v39 }
 0x136 PF: > { %p1216_p11 = scmp.ge.s32.totalorder %s1548_s11, %s1764_s18 }
 0x137   : > { %v1418_v40 = vld [vmem:[%s1788_s27] sm:$0xff] (!%p1216_p11)   ;;  %v1564_v41 = vmov (!%p1216_p11), 0.0   ;;  %v1419_v42 = vld [vmem:[%s1788_s27 + $0x8] sm:$0xff] (!%p1216_p11)   ;;  %vm1565_vm3 = vmmov (!%p1216_p11), 0   ;;  %v1566_v43 = vmov (!%p1216_p11), 0   ;;  %v1420_v44 = vld [vmem:[%s1788_s27 + $0x10] sm:$0xff] (!%p1216_p11)  }
 0x138   : > { %708 = sbr.rel (%p1216_p11) target bundleno = 805 (0x325), region = 134  ;;  %1273 = vmatprep.subr.bf16.mxu0 (!%p1216_p11), %v1564_v41  ;;  %1293 = vmatprep.subr.bf16.mxu1 (!%p1216_p11), %v1564_v41  ;;  %v1425_v45 = vld [vmem:[%s1790_s28] sm:$0xff] (!%p1216_p11)   ;;  %v1427_v46 = vld [vmem:[%s1790_s28 + $0x8] sm:$0xff] (!%p1216_p11)   ;;  %v1421_v47 = vld [vmem:[%s1788_s27 + $0x18] sm:$0xff] (!%p1216_p11)   ;;  %s1939_s17 = sld [smem:[#allocation14_spill]] (!%p1216_p11) }
 0x139   : > { %1274 = vmatpush3.bf16.msra.mxu0 (!%p1216_p11), %v1418_v40  ;;  %1289 = vmatprep.mubr.msk.bf16.mxu0 (!%p1216_p11), %vm1565_vm3, %v1564_v41  ;;  %v1428_v48 = vld [vmem:[%s1790_s28 + $0x10] sm:$0xff] (!%p1216_p11)   ;;  %v1422_v49 = vld [vmem:[%s1788_s27 + $0x20] sm:$0xff] (!%p1216_p11)   ;;  %v1423_v50 = vld [vmem:[%s1788_s27 + $0x28] sm:$0xff] (!%p1216_p11)  }
 0x13a   : > { %1275 = vmatprep.subr.bf16.mxu0 (!%p1216_p11), %v1564_v41  ;;  %1309 = vmatprep.mubr.msk.bf16.mxu1 (!%p1216_p11), %vm1565_vm3, %v1564_v41  ;;  %v1429_v51 = vld [vmem:[%s1790_s28 + $0x18] sm:$0xff] (!%p1216_p11)   ;;  %v1430_v53 = vld [vmem:[%s1790_s28 + $0x20] sm:$0xff] (!%p1216_p11)   ;;  %v1424_v54 = vld [vmem:[%s1788_s27 + $0x30] sm:$0xff] (!%p1216_p11)  }
 0x13b   : > { %1417 = vset.pattern.permute.xlu0 (!%p1216_p11), %v1566_v43  ;;  %1294 = vmatpush3.bf16.msra.mxu1 (!%p1216_p11), %v1425_v45  ;;  %v1431_v55 = vld [vmem:[%s1790_s28 + $0x28] sm:$0xff] (!%p1216_p11)   ;;  %v1426_v56 = vld [vmem:[%s1788_s27 + $0x38] sm:$0xff] (!%p1216_p11)   ;;  %v1432_v57 = vld [vmem:[%s1790_s28 + $0x30] sm:$0xff] (!%p1216_p11)  }
 0x13c   : > { %1295 = vmatprep.subr.bf16.mxu1 (!%p1216_p11), %v1564_v41  ;;  %v926_v52 = vld [vmem:[#allocation3] sm:$0xff] (!%p1216_p11)  ;;  %v1434_v60 = vld [vmem:[%s1786_s19] sm:$0xff] (!%p1216_p11)   ;;  %v1436_v62 = vld [vmem:[%s1786_s19 + $0x10] sm:$0xff] (!%p1216_p11)  }
 0x13d   : > { %1276 = vmatpush3.bf16.msra.mxu0 (!%p1216_p11), %v1419_v42  ;;  %929 = vperm.xlu0 (!%p1216_p11), %1417, %v926_v52   ;;  %v1433_v59 = vld [vmem:[%s1790_s28 + $0x38] sm:$0xff] (!%p1216_p11)   ;;  %v1437_v63 = vld [vmem:[%s1786_s19 + $0x18] sm:$0xff] (!%p1216_p11)   ;;  %v1438_v0 = vld [vmem:[%s1786_s19 + $0x20] sm:$0xff] (!%p1216_p11)  }
 0x13e   : > { %1277 = vmatprep.subr.bf16.mxu0 (!%p1216_p11), %v1564_v41  ;;  %v709_v58 = vld [vmem:[%s1939_s17] sm:$0xf] (!%p1216_p11)  ;;  %v1435_v61 = vld [vmem:[%s1786_s19 + $0x8] sm:$0xff] (!%p1216_p11)   ;;  %v1440_v2 = vld [vmem:[%s1786_s19 + $0x30] sm:$0xff] (!%p1216_p11)  }
 0x13f   : > { %1296 = vmatpush3.bf16.msra.mxu1 %v1427_v46  ;;  %v1439_v1 = vld [vmem:[%s1786_s19 + $0x28] sm:$0xff]   ;;  %v1441_v3 = vld [vmem:[%s1786_s19 + $0x38] sm:$0xff]   ;;  %v934_v21 = vld [vmem:[#allocation2] sm:$0xff] }
 0x140   : > { %1297 = vmatprep.subr.bf16.mxu1 %v1564_v41 }
 0x141   : > { %1278 = vmatpush3.bf16.msra.mxu0 %v1420_v44 }
 0x142   : > { %1279 = vmatprep.subr.bf16.mxu0 %v1564_v41 }
 0x143   : > { %1298 = vmatpush3.bf16.msra.mxu1 %v1428_v48 }
 0x144   : > { %1299 = vmatprep.subr.bf16.mxu1 %v1564_v41 }
 0x145   : > { %1280 = vmatpush3.bf16.msra.mxu0 %v1421_v47 }
 0x146   : > { %1281 = vmatprep.subr.bf16.mxu0 %v1564_v41 }
 0x147   : > { %1300 = vmatpush3.bf16.msra.mxu1 %v1429_v51 }
 0x148   : > { %1301 = vmatprep.subr.bf16.mxu1 %v1564_v41 }
 0x149   : > { %1282 = vmatpush3.bf16.msra.mxu0 %v1422_v49 }
 0x14a   : > { %1283 = vmatprep.subr.bf16.mxu0 %v1564_v41 }
 0x14b   : > { %1302 = vmatpush3.bf16.msra.mxu1 %v1430_v53 }
 0x14c   : > { %1303 = vmatprep.subr.bf16.mxu1 %v1564_v41 }
 0x14d   : > { %1284 = vmatpush3.bf16.msra.mxu0 %v1423_v50 }
 0x14e   : > { %1285 = vmatprep.subr.bf16.mxu0 %v1564_v41 }
 0x14f   : > { %1304 = vmatpush3.bf16.msra.mxu1 %v1431_v55 }
 0x150   : > { %1305 = vmatprep.subr.bf16.mxu1 %v1564_v41 }
 0x151   : > { %1286 = vmatpush3.bf16.msra.mxu0 %v1424_v54 }
 0x152   : > { %1287 = vmatprep.subr.bf16.mxu0 %v1564_v41 }
 0x153   : > { %1306 = vmatpush3.bf16.msra.mxu1 %v1432_v57 }
 0x154   : > { %1307 = vmatprep.subr.bf16.mxu1 %v1564_v41 }
 0x155   : > { %1288 = vmatpush3.bf16.msra.mxu0 %v1426_v56 }
 0x156   : > { %1313 = vmatprep.subr.bf16.mxu0 %v1564_v41 }
 0x157   : > { %1308 = vmatpush3.bf16.msra.mxu1 %v1433_v59 }
 0x158   : > { %1290 = vmatmul.mubr.bf16.vlgmr.msra.gmra.mrb[0].mxu0 %v709_v58 }
 0x159   : > { %1329 = vmatprep.mubr.msk.bf16.mxu0 %vm1565_vm3, %v1564_v41  ;;  %1314 = vmatpush3.bf16.msra.mxu0 %v1434_v60 }
 0x15a   : > { %1310 = vmatmul.mubr.bf16.vlgmr.msra.gmra.mrb[0].mxu1 %v709_v58  ;;  %1315 = vmatprep.subr.bf16.mxu0 %v1564_v41 }
 0x15d   : > { %1316 = vmatpush3.bf16.msra.mxu0 %v1435_v61 }
 0x15e   : > { %1317 = vmatprep.subr.bf16.mxu0 %v1564_v41 }
 0x161   : > { %1318 = vmatpush3.bf16.msra.mxu0 %v1436_v62 }
 0x162   : > { %1319 = vmatprep.subr.bf16.mxu0 %v1564_v41 }
 0x165   : > { %1320 = vmatpush3.bf16.msra.mxu0 %v1437_v63 }
 0x166   : > { %1321 = vmatprep.subr.bf16.mxu0 %v1564_v41 }
 0x169   : > { %1322 = vmatpush3.bf16.msra.mxu0 %v1438_v0 }
 0x16a   : > { %1323 = vmatprep.subr.bf16.mxu0 %v1564_v41 }
 0x16d   : > { %1324 = vmatpush3.bf16.msra.mxu0 %v1439_v1 }
 0x16e   : > { %1325 = vmatprep.subr.bf16.mxu0 %v1564_v41 }
 0x171   : > { %1326 = vmatpush3.bf16.msra.mxu0 %v1440_v2 }
 0x172   : > { %1327 = vmatprep.subr.bf16.mxu0 %v1564_v41 }
 0x175   : > { %1328 = vmatpush3.bf16.msra.mxu0 %v1441_v3 }
 0x1bc   : > { %v930_v17 = vpop.permute.xlu0 %929 }
 0x22b   : > { %v808_v4 = vpop.f32.mrb[0].mxu0 }
 0x22c   : > { %v1233_v5 = vmul.f32 -1.442695, %v808_v4  ;;  %v1291_v6 = vpop.f32.mrb[1].mxu0 }
 0x22d   : > { %v811_v7 = vpop.f32.mrb[2].mxu0  ;;  %v912_v9 = vpop.f32.mrb[0].mxu1 }
 0x22e   : > { %1442 = vpow2.f32 %v1233_v5  ;;  %v1292_v8 = vpop.f32.mrb[3].mxu0  ;;  %v1311_v10 = vpop.f32.mrb[1].mxu1 }
 0x22f   : > { %v915_v11 = vpop.f32.mrb[2].mxu1 }
 0x230   : > { %v1312_v12 = vpop.f32.mrb[3].mxu1 }
 0x238   : > { %v1443_v13 = vpop.eup %1442 }
 0x239   : > { %v921_v14 = vadd.f32 1.0, %v1443_v13 }
 0x23b   : > { %1444 = vrcp.f32 %v921_v14 }
 0x245   : > { %v1445_v15 = vpop.eup %1444 }
 0x246   : > { %v924_v16 = vmul.f32 %v1445_v15, %v808_v4 }
 0x248   : > { %v925_v18 = vmul.f32 %v924_v16, %v912_v9 }
 0x24a   : > { %v932_v19 = vmul.f32 %v930_v17, %v925_v18 }
 0x24c   : > { %v933_v20 = vpack.c.bf16 %v932_v19, %v932_v19 }
 0x24e   : > { %1330 = vmatmul.mubr.bf16.vlgmr.msra.gmra.mrb[4].mxu0 %v933_v20 }
 0x321   : > { %v1033_v22 = vpop.f32.mrb[4].mxu0 }
 0x322   : > { %v1039_v23 = vadd.f32 %v1033_v22, %v934_v21  ;;  %v1331_v24 = vpop.f32.mrb[5].mxu0 }
 0x323   : > { %v1036_v25 = vpop.f32.mrb[6].mxu0 }
 0x324   : > { %1040 = vst [vmem:[#allocation2] sm:$0xff] %v1039_v23  ;;  %v1332_v26 = vpop.f32.mrb[7].mxu0 }
 0x325 PF: > { %p1041_p12 = scmp.eq.s32.totalorder %s1548_s11, 7  ;;  %p1042_p13 = scmp.eq.s32.totalorder %s1544_s10, 1 }
 0x327   : > { %p1043_p0 = pnand %p1042_p13, %p1041_p12 }
 0x329   : > { %1046 = sbr.rel (%p1043_p0) target bundleno = 816 (0x330), region = 138 }
 0x32b   : > { %v1047_v27 = vld [vmem:[#allocation2] sm:$0xff] (!%p1043_p0) }
 0x32c   : > { %1048 = vst [vmem:[#allocation9] sm:$0xff] (!%p1043_p0), %v1047_v27 }
 0x330 PF: > { %s1940_s8 = sadd.s32 4294967295, %s1560_s14   ;;  %s1567_s2 = smov [#allocation9]  }
 0x331   : > { %p1866_p1 = scmp.eq.s32.totalorder %s1940_s8, 15  ;;  %s1058_s6 = sshll.u32 %s1567_s2, 4  ;;  %s1059_s6 = int_to_ptr.vmem [resolvable:$true] %s1058_s6 }
 0x332   : > { %s1458_s7 = scalar_lea.vmem %s1059_s6, 128  ;;  %p1465_p5 = scmp.lt.s32.totalorder %s1059_s6, %s1059_s6 }
 0x333   : > { %p1459_p2 = scmp.ne.s32.totalorder %s1059_s6, %s1458_s7  ;;  %p1466_p6 = scmp.lt.s32.totalorder %s1458_s7, %s1458_s7 }
 0x335   : > { %p1460_p3 = pnand %p1459_p2, %p1866_p1  ;;  %p1467_p7 = por %p1466_p6, %p1465_p5 }
 0x337   : > { %p1461_p4 = pneg %p1460_p3 }
 0x339   : > { %p1468_p8 = pnand %p1467_p7, %p1461_p4 }
 0x33b   : > { %1471 = shalt.err (!%p1468_p8)
}
 0x33c   : > { %s1942_s23 = sld [smem:[#allocation17_spill]] }
 0x342   : > { %s1472_s26 = scalar_lea.hbm %s1942_s23, 128 }
 0x343   : > { %p1473_p10 = scmp.ne.s32.totalorder %s1942_s23, %s1472_s26  ;;  %p1478_p12 = scmp.lt.u32.totalorder %s1472_s26, %s1942_s23 }
 0x345   : > { %p1474_p9 = pnand %p1473_p10, %p1866_p1 }
 0x347   : > { %p1475_p11 = pneg %p1474_p9 }
 0x349   : > { %p1480_p13 = pnand %p1478_p12, %p1475_p11 }
 0x34b   : > { %1483 = shalt.err (!%p1480_p13)
}
 0x34c   : > { %1334 = dma.vmem_to_hbm [thread:$0]  (%p1866_p1), %s1059_s6, 128, %s1942_s23, [#allocation10]  }
 0x34d   : > { %1523 = dma.done.wait (%p1866_p1), [#allocation10], 128  }
 0x34e   : > { %1525 = vsyncadd (%p1866_p1), [#allocation10], 4294967168 }
 0x34f PF: > { %s25_s14 = sadd.s32 1, %s1560_s14   ;;  %s1943_s30 = sld [smem:[#allocation13_spill]] }
 0x350   : > { %p22_p0 = scmp.ge.s32.totalorder %s25_s14, 18   ;;  %s1944_s8 = smov %s1532_s0 }
 0x351   : > { %s1945_s0 = smov %s1701_s5  ;;  %s1946_s9 = smov %s1540_s1 }
 0x352   : > { %s1947_s1 = smov %s1697_s15  ;;  %s1948_s10 = smov %s1552_s12 }
 0x353   : > { %s1949_s11 = smov %s1556_s13  ;;  %s1950_s12 = smov %s1953_s16 }
 0x354   :  { %24 = sbr.rel (!%p22_p0) target bundleno = 22 (0x16), region = 188 }
 0x355   : > { %s1951_s13 = smov %s1943_s30 }
 0x35b   :  { %1071 = vsyncpa [#allocation10], 1 }
 0x35c   :  { %1073 = vsyncpa [#allocation10 + $0x1], 1 }

</bundles_post_ra>
